<compile_context>
chip_gen: v7x
topology: tpu7x:2x2x1
jax: 0.10.0
libtpu: 0.0.40
codegen_flags: <defaults>
</compile_context>

<pallas_src>
import jax
import jax.numpy as jnp
from jax.experimental import pallas as pl
from jax.experimental.pallas import tpu as pltpu

EMBEDDING_DIM = 8
VOCAB_SIZE = 32
BATCH = 8

_NEG_BIG = -1e30  # bias for padded vocab columns: exp(pad - max) == 0 exactly


def _skipgram_kernel(ids_ref, p_ref, b_ref, o_ref):
    # ids_ref: (TM, 1)  int32   token ids for this batch tile
    # p_ref  : (Vp, Vp) bf16    fused emb_table @ W^T, vocab padded to Vp
    # b_ref  : (1, Vp)  f32     bias (-1e30 on padded columns)
    # o_ref  : (TM, Vp) f32     log-probs (padded columns ~ -1e30, sliced off)
    tm = ids_ref.shape[0]
    vp = p_ref.shape[0]

    ids = ids_ref[...]                                            # (TM, 1) i32
    col = jax.lax.broadcasted_iota(jnp.int32, (tm, vp), 1)        # (TM, Vp)
    one_hot = (col == ids).astype(p_ref.dtype)                    # (TM, Vp) bf16

    # Fused gather + linear on the MXU: one_hot @ P is an exact 0/1 row gather
    # of bf16 P rows with f32 accumulation.
    logits = jnp.dot(one_hot, p_ref[...],
                     preferred_element_type=jnp.float32) + b_ref[...]

    # Numerically stable log-softmax over the (padded) vocab axis, all in f32.
    m = jnp.max(logits, axis=-1, keepdims=True)
    shifted = logits - m
    lse = jnp.log(jnp.sum(jnp.exp(shifted), axis=-1, keepdims=True))
    o_ref[...] = (shifted - lse).astype(o_ref.dtype)


def prepare_skipgram_params(emb_table, w, bias):
    """One-time parameter prep (call at init, NOT per forward).

    emb_table: (V, D) f32 embedding table
    w:         (V, D) f32 linear weight (nn.Linear layout)
    bias:      (V,)   f32 linear bias

    Returns (p_pad, b_pad): padded bf16 fused weight (Vp, Vp) and padded f32
    bias (1, Vp), Vp = round_up(V, 128).
    """
    v, d = emb_table.shape
    vp = pl.cdiv(v, 128) * 128

    # Fuse Embedding + Linear: logits[i] = emb_table[ids[i]] @ W^T + b
    #                                    = P[ids[i]] + b,  P = emb_table @ W^T
    p = jnp.dot(emb_table.astype(jnp.float32), w.astype(jnp.float32).T,
                preferred_element_type=jnp.float32).astype(jnp.bfloat16)
    p_pad = jnp.zeros((vp, vp), jnp.bfloat16).at[:v, :v].set(p)
    b_pad = jnp.full((1, vp), _NEG_BIG, jnp.float32).at[0, :v].set(
        bias.astype(jnp.float32))
    return p_pad, b_pad


def skipgram_forward(inputs, p_pad, b_pad, vocab_size):
    """inputs: (N,) int token ids; p_pad/b_pad from prepare_skipgram_params.

    Returns (N, V) float32 log-probs (log_softmax over the vocab axis).
    """
    vp = p_pad.shape[1]
    n = inputs.shape[0]

    # Right-size the batch tile: f32 output min sublane is 8; only go to 128
    # (sweep 256/512 on v6e) when the batch is actually large.
    tm = min(128, pl.cdiv(n, 8) * 8)
    n_pad = pl.cdiv(n, tm) * tm

    # Only the (tiny) id vector is padded per call; weights were padded once.
    ids = jnp.zeros((n_pad, 1), jnp.int32).at[:n, 0].set(
        inputs.astype(jnp.int32))

    out = pl.pallas_call(
        _skipgram_kernel,
        out_shape=jax.ShapeDtypeStruct((n_pad, vp), jnp.float32),
        grid=(n_pad // tm,),
        in_specs=[
            pl.BlockSpec((tm, 1), lambda i: (i, 0)),    # ids: tiled over batch
            pl.BlockSpec((vp, vp), lambda i: (0, 0)),   # fused P: VMEM-resident
            pl.BlockSpec((1, vp), lambda i: (0, 0)),    # bias:    VMEM-resident
        ],
        out_specs=pl.BlockSpec((tm, vp), lambda i: (i, 0)),
        # Only shards across v7x TCs when n_pad // tm >= 2; no-op otherwise.
        compiler_params=pltpu.CompilerParams(
            dimension_semantics=("parallel",)),
    )(ids, p_pad, b_pad)

    return out[:n, :vocab_size]


if __name__ == "__main__":
    key = jax.random.PRNGKey(0)
    k_emb, k_w, k_b, k_in = jax.random.split(key, 4)

    # Deterministic parameter init mirroring nn.Embedding / nn.Linear shapes.
    emb_table = jax.random.normal(k_emb, (VOCAB_SIZE, EMBEDDING_DIM),
                                  dtype=jnp.float32)           # Embedding: N(0,1)
    bound = 1.0 / jnp.sqrt(EMBEDDING_DIM)
    w = jax.random.uniform(k_w, (VOCAB_SIZE, EMBEDDING_DIM),
                           minval=-bound, maxval=bound,
                           dtype=jnp.float32)                  # Linear weight (V, D)
    bias = jax.random.uniform(k_b, (VOCAB_SIZE,),
                              minval=-bound, maxval=bound,
                              dtype=jnp.float32)

    inputs = jax.random.randint(k_in, (BATCH,), 0, VOCAB_SIZE, dtype=jnp.int32)

    # One-time parameter prep (hoisted out of the hot path).
    p_pad, b_pad = prepare_skipgram_params(emb_table, w, bias)

    out = skipgram_forward(inputs, p_pad, b_pad, VOCAB_SIZE)
    out = jax.block_until_ready(out)

    # Pure-JAX reference using the same bf16-quantized fused weight (f32 math).
    p_ref = p_pad[:VOCAB_SIZE, :VOCAB_SIZE].astype(jnp.float32)
    ref_logits = jnp.take(p_ref, inputs, axis=0) + bias
    ref = jax.nn.log_softmax(ref_logits, axis=1)

    assert out.shape == (BATCH, VOCAB_SIZE)
    assert jnp.allclose(out, ref, atol=1e-4, rtol=1e-4), (
        float(jnp.max(jnp.abs(out - ref))))

    print("KERNEL_OK")
</pallas_src>

<mosaic_0001>
module attributes {stable_mosaic.version = 11 : i64} {
  func.func @_skipgram_kernel(%arg0: i32, %arg1: memref<8x1xi32, #tpu.memory_space<vmem>>, %arg2: memref<128x128xbf16, #tpu.memory_space<vmem>>, %arg3: memref<1x128xf32, #tpu.memory_space<vmem>>, %arg4: memref<8x128xf32, #tpu.memory_space<vmem>>) attributes {dimension_semantics = [#tpu.dimension_semantics<parallel>], iteration_bounds = array<i64: 1>, scalar_prefetch = 0 : i64, scratch_operands = 0 : i64, tpu.core_type = #tpu.core_type<tc>, window_params = [{transform_indices = @transform_0, window_bounds = array<i64: 8, 1>}, {pipeline_mode = #tpu.pipeline_mode<synchronous>, transform_indices = @transform_1, window_bounds = array<i64: 128, 128>}, {pipeline_mode = #tpu.pipeline_mode<synchronous>, transform_indices = @transform_2, window_bounds = array<i64: 1, 128>}, {transform_indices = @transform_3, window_bounds = array<i64: 8, 128>}]} {
    %c0 = arith.constant 0 : index
    %c0_0 = arith.constant 0 : index
    %0 = vector.load %arg1[%c0, %c0_0] : memref<8x1xi32, #tpu.memory_space<vmem>>, vector<8x1xi32>
    %1 = tpu.iota {dimensions = array<i32: 1>} : vector<8x128xi32>
    %2 = vector.broadcast %0 : vector<8x1xi32> to vector<8x128xi32>
    %3 = arith.cmpi eq, %1, %2 : vector<8x128xi32>
    %4 = arith.extui %3 : vector<8x128xi1> to vector<8x128xi32>
    %5 = arith.sitofp %4 : vector<8x128xi32> to vector<8x128xf32>
    %6 = arith.truncf %5 : vector<8x128xf32> to vector<8x128xbf16>
    %c0_1 = arith.constant 0 : index
    %c0_2 = arith.constant 0 : index
    %7 = vector.load %arg2[%c0_1, %c0_2] : memref<128x128xbf16, #tpu.memory_space<vmem>>, vector<128x128xbf16>
    %cst = arith.constant dense<0.000000e+00> : vector<8x128xf32>
    %8 = tpu.matmul %6, %7, %cst {dimension_numbers = #tpu.dot_dimension_numbers<[1], [0], [0], [1], [0, 0, 1, 1], [], []>} : vector<8x128xbf16>, vector<128x128xbf16>, vector<8x128xf32> -> vector<8x128xf32>
    %c0_3 = arith.constant 0 : index
    %c0_4 = arith.constant 0 : index
    %9 = vector.load %arg3[%c0_3, %c0_4] : memref<1x128xf32, #tpu.memory_space<vmem>>, vector<1x128xf32>
    %10 = vector.broadcast %9 : vector<1x128xf32> to vector<8x128xf32>
    %11 = arith.addf %8, %10 : vector<8x128xf32>
    %cst_5 = arith.constant dense<0xFF800000> : vector<8xf32>
    %12 = vector.multi_reduction <maximumf>, %11, %cst_5 [1] : vector<8x128xf32> to vector<8xf32>
    %13 = vector.shape_cast %12 : vector<8xf32> to vector<8x1xf32>
    %14 = vector.broadcast %13 : vector<8x1xf32> to vector<8x128xf32>
    %15 = arith.subf %11, %14 : vector<8x128xf32>
    %16 = math.exp %15 : vector<8x128xf32>
    %cst_6 = arith.constant dense<0.000000e+00> : vector<8xf32>
    %17 = vector.multi_reduction <add>, %16, %cst_6 [1] : vector<8x128xf32> to vector<8xf32>
    %18 = vector.shape_cast %17 : vector<8xf32> to vector<8x1xf32>
    %19 = math.log %18 : vector<8x1xf32>
    %20 = vector.broadcast %19 : vector<8x1xf32> to vector<8x128xf32>
    %21 = arith.subf %15, %20 : vector<8x128xf32>
    %c0_7 = arith.constant 0 : index
    %c0_8 = arith.constant 0 : index
    %22 = vector.load %arg4[%c0_7, %c0_8] : memref<8x128xf32, #tpu.memory_space<vmem>>, vector<8x128xf32>
    tpu.vector_store %arg4[%c0_7, %c0_8], %21 {strides = array<i32>} : memref<8x128xf32, #tpu.memory_space<vmem>>, vector<8x128xf32>,
    return
  }
  func.func @transform_0(%arg0: i32) -> (i32, i32) {
    %c0_i32 = arith.constant 0 : i32
    %c0_i32_0 = arith.constant 0 : i32
    return %arg0, %c0_i32 : i32, i32
  }
  func.func @transform_1(%arg0: i32) -> (i32, i32) {
    %c0_i32 = arith.constant 0 : i32
    %c0_i32_0 = arith.constant 0 : i32
    %c0_i32_1 = arith.constant 0 : i32
    return %c0_i32, %c0_i32_0 : i32, i32
  }
  func.func @transform_2(%arg0: i32) -> (i32, i32) {
    %c0_i32 = arith.constant 0 : i32
    %c0_i32_0 = arith.constant 0 : i32
    %c0_i32_1 = arith.constant 0 : i32
    return %c0_i32, %c0_i32_0 : i32, i32
  }
  func.func @transform_3(%arg0: i32) -> (i32, i32) {
    %c0_i32 = arith.constant 0 : i32
    %c0_i32_0 = arith.constant 0 : i32
    return %arg0, %c0_i32 : i32, i32
  }
}

</mosaic_0001>

<bundles_post_ra>
// kernel: tpu_custom_call.1
= control target key start
LH: loop header
LB: loop body
LE: loop exit
PB: predicated region body
PF: predicated region fallthrough
CT: control target
= control target key end

     0   :  { %8 = vsyncpa [#allocation3], 0  ;;  %s345_s0 = inlined_call_operand.vmem [shape: s32[8,1], index: 0, kind: input, shape index: {}]   ;;  %s346_s1 = inlined_call_operand.hbm [shape: bf16[128,128], index: 1, kind: input, shape index: {}]   ;;  %s347_s2 = inlined_call_operand.vmem [shape: f32[1,128], index: 2, kind: input, shape index: {}]   ;;  %s348_s3 = inlined_call_operand.hbm [shape: f32[8,128], index: 3, kind: output, shape index: {}]  }
   0x1   :  { %9 = vsyncpa [#allocation4], 0  ;;  %s287_s12 = smov [#allocation2]   ;;  %s239_s16 = scalar_lea.hbm %s346_s1, 1024 }
   0x2   :  { %s17_s13 = sshll.u32 %s287_s12, 4  ;;  %p240_p0 = scmp.ne.s32.totalorder %s346_s1, %s239_s16  ;;  %s18_s13 = int_to_ptr.vmem [resolvable:$true] %s17_s13 }
   0x3   :  { %p243_p1 = scmp.lt.u32.totalorder %s239_s16, %s346_s1 }
   0x5   :  { %p245_p2 = pnand %p243_p1, %p240_p0 }
   0x7   :  { %248 = shalt.err (!%p245_p2)
}
   0x8   :  { %s249_s21 = scalar_lea.vmem %s18_s13, 1024  ;;  %p254_p4 = scmp.lt.s32.totalorder %s18_s13, %s18_s13 }
   0x9   :  { %p250_p3 = scmp.ne.s32.totalorder %s18_s13, %s249_s21  ;;  %p255_p5 = scmp.lt.s32.totalorder %s249_s21, %s249_s21 }
   0xb   :  { %p256_p6 = por %p255_p5, %p254_p4 }
   0xd   :  { %p257_p7 = pnand %p256_p6, %p250_p3 }
   0xf   :  { %260 = shalt.err (!%p257_p7)
}
  0x10   :  { %s288_s22 = smov 64   ;;  %s289_s23 = smov 4  }
  0x11   :  { %23 = dma.hbm_to_vmem [thread:$0]  %s346_s1, 1024, %s18_s13, [#allocation3], %s288_s22, %s288_s22, %s289_s23  }
  0x12   :  { %283 = dma.done.wait [#allocation3], 1024  }
  0x13   :  { %284 = vsyncadd [#allocation3], 4294966272  ;;  %v290_v0 = vmov 0   ;;  %v291_v1 = vmov 0.0   ;;  %v30_v2 = vld [vmem:[%s345_s0] sm:$0xff]  ;;  %v227_v3 = vld [vmem:[#allocation2] sm:$0xff]   ;;  %v31_v11 = vlaneseq }
  0x14   :  { %226 = vset.pattern.permute.xlu0 %v290_v0  ;;  %198 = vmatprep.subr.bf16.mxu0 %v291_v1  ;;  %vm292_vm0 = vmmov 0   ;;  %v228_v4 = vld [vmem:[#allocation2 + $0x8] sm:$0xff]   ;;  %v229_v5 = vld [vmem:[#allocation2 + $0x10] sm:$0xff]   ;;  %v230_v6 = vld [vmem:[#allocation2 + $0x18] sm:$0xff]   ;;  %v293_v14 = vmov 1.0|1.0  }
  0x15   :  { %34 = vperm.xlu0 %226, %v30_v2   ;;  %214 = vmatprep.mubr.msk.bf16.mxu0 %vm292_vm0, %v291_v1  ;;  %v231_v7 = vld [vmem:[#allocation2 + $0x20] sm:$0xff]   ;;  %v232_v8 = vld [vmem:[#allocation2 + $0x28] sm:$0xff]   ;;  %v233_v9 = vld [vmem:[#allocation2 + $0x30] sm:$0xff]   ;;  %v32_v12 = vand.u32 127, %v31_v11  ;;  %s294_s28 = smov [#allocation5]  }
  0x16   :  { %199 = vmatpush3.bf16.msra.mxu0 %v227_v3  ;;  %v234_v10 = vld [vmem:[#allocation2 + $0x38] sm:$0xff]   ;;  %s168_s29 = sshll.u32 %s294_s28, 4  ;;  %s169_s29 = int_to_ptr.vmem [resolvable:$true] %s168_s29 }
  0x17   :  { %200 = vmatprep.subr.bf16.mxu0 %v291_v1  ;;  %v178_v15 = vld [vmem:[%s347_s2] ss:$0 sm:$0xff]  ;;  %s261_s2 = scalar_lea.vmem %s169_s29, 128  ;;  %p266_p9 = scmp.lt.s32.totalorder %s169_s29, %s169_s29 }
  0x18   :  { %p262_p8 = scmp.ne.s32.totalorder %s169_s29, %s261_s2  ;;  %p267_p10 = scmp.lt.s32.totalorder %s261_s2, %s261_s2 }
  0x1a   :  { %201 = vmatpush3.bf16.msra.mxu0 %v228_v4  ;;  %p268_p11 = por %p267_p10, %p266_p9 }
  0x1b   :  { %202 = vmatprep.subr.bf16.mxu0 %v291_v1 }
  0x1c   :  { %p269_p12 = pnand %p268_p11, %p262_p8 }
  0x1e   :  { %203 = vmatpush3.bf16.msra.mxu0 %v229_v5 }
  0x1f   :  { %204 = vmatprep.subr.bf16.mxu0 %v291_v1 }
  0x22   :  { %205 = vmatpush3.bf16.msra.mxu0 %v230_v6 }
  0x23   :  { %206 = vmatprep.subr.bf16.mxu0 %v291_v1 }
  0x26   :  { %207 = vmatpush3.bf16.msra.mxu0 %v231_v7 }
  0x27   :  { %208 = vmatprep.subr.bf16.mxu0 %v291_v1 }
  0x2a   :  { %209 = vmatpush3.bf16.msra.mxu0 %v232_v8 }
  0x2b   :  { %210 = vmatprep.subr.bf16.mxu0 %v291_v1 }
  0x2e   :  { %211 = vmatpush3.bf16.msra.mxu0 %v233_v9 }
  0x2f   :  { %212 = vmatprep.subr.bf16.mxu0 %v291_v1 }
  0x32   :  { %213 = vmatpush3.bf16.msra.mxu0 %v234_v10 }
  0x94   :  { %v35_v13 = vpop.permute.xlu0 %34 }
  0x95   :  { %vm36_vm1 = vcmp.eq.s32.totalorder %v32_v12, %v35_v13 }
  0x96   :  { %vm187_vm2 = vmpackc.low %vm36_vm1, %vm36_vm1 }
  0x97   :  { %215 = vmatmul.mubr.msk.bf16.vlgmr.msra.gmra.mrb[0].mxu0 %vm187_vm2, %v293_v14 }
 0x16a   :  { %v145_v16 = vpop.f32.mrb[0].mxu0 }
 0x16b   :  { %v146_v17 = vadd.f32 %v178_v15, %v145_v16  ;;  %v216_v18 = vpop.f32.mrb[1].mxu0 }
 0x16c   :  { %v148_v19 = vpop.f32.mrb[2].mxu0 }
 0x16d   :  { %151 = vmax.xlane.f32.xlu0 %v146_v17  ;;  %v217_v20 = vpop.f32.mrb[3].mxu0 }
 0x1fa   :  { %v152_v21 = vpop.xlane.xlu0 %151 }
 0x1fb   :  { %v153_v22 = vsub.f32 %v146_v17, %v152_v21 }
 0x1fd   :  { %v154_v23 = vmul.f32 1.442695, %v153_v22 }
 0x1ff   :  { %235 = vpow2.f32 %v154_v23 }
 0x209   :  { %v236_v24 = vpop.eup %235 }
 0x20a   :  { %156 = vadd.xlane.f32.xlu1 %v236_v24 }
 0x297   :  { %v157_v25 = vpop.xlane.xlu1 %156 }
 0x298   :  { %237 = vlog2.f32 %v157_v25 }
 0x2a2   :  { %v238_v26 = vpop.eup %237 }
 0x2a3   :  { %v159_v27 = vmul.f32 0.6931472, %v238_v26 }
 0x2a5   :  { %v160_v28 = vsub.f32 %v153_v22, %v159_v27 }
 0x2a7   :  { %161 = vst [vmem:[#allocation5] sm:$0xff] %v160_v28 }
 0x2a8   :  { %272 = shalt.err (!%p269_p12)
}
 0x2a9   :  { %s273_s5 = scalar_lea.hbm %s348_s3, 128 }
 0x2aa   :  { %p274_p13 = scmp.ne.s32.totalorder %s348_s3, %s273_s5  ;;  %p277_p0 = scmp.lt.u32.totalorder %s273_s5, %s348_s3 }
 0x2ac   :  { %p279_p1 = pnand %p277_p0, %p274_p13 }
 0x2ae   :  { %282 = shalt.err (!%p279_p1)
}
 0x2af   :  { %171 = dma.vmem_to_hbm [thread:$0]  %s169_s29, 128, %s348_s3, [#allocation4]  }
 0x2b0   :  { %285 = dma.done.wait [#allocation4], 128  }
 0x2b1   :  { %286 = vsyncadd [#allocation4], 4294967168 }
 0x2b2   :  { %175 = vsyncpa [#allocation3], 1 }
 0x2b3   :  { %176 = vsyncpa [#allocation4], 1 }

</bundles_post_ra>
